<compile_context>
chip_gen: v7x
topology: tpu7x:2x2x1
jax: 0.10.0
libtpu: 0.0.40
codegen_flags: <defaults>
</compile_context>

<pallas_src>
import jax
import jax.numpy as jnp
from jax.experimental import pallas as pl
from jax.experimental.pallas import tpu as pltpu

_LANES = 512                       # lane-dense slab width (multiple of 128)
_BLOCK_BYTES = 2 * 1024 * 1024     # ~2 MiB per block buffer (v5e/v6e/v7x safe)
_SINGLE_BLOCK_BYTES = 256 * 1024   # below this a single grid step is fine
_TINY_BYTES = 64 * 1024            # below this, plain XLA beats a kernel launch


def _binary_sigmoid_kernel(x_ref, o_ref):
    x = x_ref[...]
    s = jax.nn.sigmoid(x)
    # torch.round == round-half-to-even == jnp.round; keep the exact op order
    # of the PyTorch forward:  s + round(s).detach() - s.detach()
    o_ref[...] = ((s + jnp.round(s)) - s).astype(o_ref.dtype)


def _round_up(a, b):
    return ((a + b - 1) // b) * b


def _sublane_multiple(dtype):
    # 8 sublanes of 32-bit words; sub-32-bit dtypes pack along sublanes.
    itemsize = jnp.dtype(dtype).itemsize
    return max(8, 8 * (4 // max(itemsize, 1)))  # f32->8, bf16->16, int8->32


def _binary_sigmoid_2d(slab):
    """Run the Pallas kernel over a lane-dense (rows, lanes) 2-D view."""
    rows, lanes = slab.shape
    dtype = slab.dtype
    itemsize = jnp.dtype(dtype).itemsize
    sub = _sublane_multiple(dtype)
    total = rows * lanes
    total_bytes = total * itemsize

    # Largest row count per block keeping one block buffer around ~2 MiB.
    max_block_rows = max(sub, (_BLOCK_BYTES // (lanes * itemsize)) // sub * sub)

    if rows <= max_block_rows and total_bytes <= _SINGLE_BLOCK_BYTES:
        # Small enough: one block covering everything (block == full array dim,
        # so no divisibility constraint and no padding).
        tile_rows = rows
    else:
        # Aim for ~4 grid steps so the pipeline overlaps DMA and compute.
        tile_rows = _round_up(pl.cdiv(rows, 4), sub)
        tile_rows = min(tile_rows, max_block_rows)
        if tile_rows >= rows:
            tile_rows = rows
        else:
            grid_len = pl.cdiv(rows, tile_rows)
            # v7x megacore: nudge toward an even number of parallel steps.
            if grid_len > 2 and grid_len % 2 == 1:
                alt = _round_up(pl.cdiv(rows, grid_len + 1), sub)
                alt = min(max(alt, sub), max_block_rows)
                if alt < rows:
                    tile_rows = alt

    grid_len = pl.cdiv(rows, tile_rows)

    cost = pl.CostEstimate(
        flops=3 * total,
        transcendentals=total,
        bytes_accessed=2 * total * itemsize,
    )

    return pl.pallas_call(
        _binary_sigmoid_kernel,
        out_shape=jax.ShapeDtypeStruct((rows, lanes), dtype),
        grid_spec=pltpu.PrefetchScalarGridSpec(
            num_scalar_prefetch=0,
            grid=(grid_len,),
            in_specs=[pl.BlockSpec((tile_rows, lanes), lambda i: (i, 0))],
            out_specs=pl.BlockSpec((tile_rows, lanes), lambda i: (i, 0)),
        ),
        compiler_params=pltpu.CompilerParams(
            dimension_semantics=("parallel",),
        ),
        cost_estimate=cost,
    )(slab)


@jax.jit
def binary_sigmoid(x):
    """Elementwise straight-through binary sigmoid, any input shape."""
    orig_shape = x.shape
    total = x.size
    dtype = x.dtype
    itemsize = jnp.dtype(dtype).itemsize

    if total == 0:
        return x

    # Tiny inputs: kernel launch + layout plumbing dominate; XLA fuses this.
    if total * itemsize < _TINY_BYTES:
        s = jax.nn.sigmoid(x)
        return (s + jnp.round(s)) - s

    sub = _sublane_multiple(dtype)

    # 1) Last dim already lane-dense: collapse leading dims, zero-copy.
    if (x.ndim >= 2
            and orig_shape[-1] % 128 == 0
            and orig_shape[-1] * itemsize * sub <= _BLOCK_BYTES):
        lanes = orig_shape[-1]
        rows = total // lanes
        out = _binary_sigmoid_2d(x.reshape(rows, lanes))
        return out.reshape(orig_shape)

    # 2) Total divides the slab width: zero-copy re-slab to (rows, 512).
    if total % _LANES == 0:
        rows = total // _LANES
        out = _binary_sigmoid_2d(x.reshape(rows, _LANES))
        return out.reshape(orig_shape)

    # 3) Fallback: pad at most one 512-wide row to get a lane-dense slab.
    rows = pl.cdiv(total, _LANES)
    padded = rows * _LANES
    flat = jnp.pad(x.reshape(-1), (0, padded - total))
    out = _binary_sigmoid_2d(flat.reshape(rows, _LANES))
    return out.reshape(-1)[:total].reshape(orig_shape)


if __name__ == "__main__":
    key = jax.random.PRNGKey(0)

    def ref_fn(v):
        s = jax.nn.sigmoid(v)
        return (s + jnp.round(s)) - s

    # Main example: scaled-down gen_x(num_x=64, batch_size) — big enough to
    # take the Pallas path (512 KiB f32 -> 4 pipelined grid steps).
    num_x = 64
    batch_size = 2048
    x = jax.random.uniform(key, (batch_size, num_x), dtype=jnp.float32)
    out = jax.block_until_ready(binary_sigmoid(x))

    ok = out.shape == x.shape and out.dtype == x.dtype
    ok = ok and bool(jnp.allclose(out, ref_fn(x)))

    # Extra coverage: tiny fallback path and a non-lane-aligned padded path.
    k1, k2 = jax.random.split(key)
    x_tiny = jax.random.uniform(k1, (16, num_x), dtype=jnp.float32)
    x_odd = jax.random.normal(k2, (300, 257), dtype=jnp.float32)
    for xt in (x_tiny, x_odd):
        ot = jax.block_until_ready(binary_sigmoid(xt))
        ok = ok and ot.shape == xt.shape and bool(jnp.allclose(ot, ref_fn(xt)))

    assert ok, "mismatch vs reference"
    print("KERNEL_OK")
</pallas_src>

<mosaic_0001>
module attributes {stable_mosaic.version = 11 : i64} {
  func.func @_binary_sigmoid_kernel(%arg0: i32, %arg1: memref<64x512xf32, #tpu.memory_space<vmem>>, %arg2: memref<64x512xf32, #tpu.memory_space<vmem>>) attributes {dimension_semantics = [#tpu.dimension_semantics<parallel>], iteration_bounds = array<i64: 4>, scalar_prefetch = 0 : i64, scratch_operands = 0 : i64, tpu.core_type = #tpu.core_type<tc>, window_params = [{transform_indices = @transform_0, window_bounds = array<i64: 64, 512>}, {transform_indices = @transform_1, window_bounds = array<i64: 64, 512>}]} {
    %c0 = arith.constant 0 : index
    %c0_0 = arith.constant 0 : index
    %0 = vector.load %arg1[%c0, %c0_0] : memref<64x512xf32, #tpu.memory_space<vmem>>, vector<64x512xf32>
    %1 = arith.negf %0 : vector<64x512xf32>
    %2 = math.exp %1 : vector<64x512xf32>
    %cst = arith.constant 1.000000e+00 : f32
    %3 = vector.broadcast %cst : f32 to vector<64x512xf32>
    %4 = arith.addf %3, %2 : vector<64x512xf32>
    %5 = arith.divf %3, %4 : vector<64x512xf32>
    %6 = math.roundeven %5 : vector<64x512xf32>
    %7 = arith.addf %5, %6 : vector<64x512xf32>
    %8 = arith.subf %7, %5 : vector<64x512xf32>
    %c0_1 = arith.constant 0 : index
    %c0_2 = arith.constant 0 : index
    %9 = vector.load %arg2[%c0_1, %c0_2] : memref<64x512xf32, #tpu.memory_space<vmem>>, vector<64x512xf32>
    tpu.vector_store %arg2[%c0_1, %c0_2], %8 {strides = array<i32>} : memref<64x512xf32, #tpu.memory_space<vmem>>, vector<64x512xf32>,
    return
  }
  func.func @transform_0(%arg0: i32) -> (i32, i32) {
    %c0_i32 = arith.constant 0 : i32
    %c0_i32_0 = arith.constant 0 : i32
    return %arg0, %c0_i32 : i32, i32
  }
  func.func @transform_1(%arg0: i32) -> (i32, i32) {
    %c0_i32 = arith.constant 0 : i32
    %c0_i32_0 = arith.constant 0 : i32
    return %arg0, %c0_i32 : i32, i32
  }
}

</mosaic_0001>

<bundles_post_ra>
// kernel: binary_sigmoid.1
= control target key start
LH: loop header
LB: loop body
LE: loop exit
PB: predicated region body
PF: predicated region fallthrough
CT: control target
= control target key end

     0   :  { %s768_s6 = smov 0   ;;  %s866_s0 = inlined_call_operand.vmem [shape: f32[256,512], index: 0, kind: input, shape index: {}]   ;;  %s867_s1 = inlined_call_operand.vmem [shape: f32[256,512], index: 1, kind: output, shape index: {}]  }
   0x1 LB: > { %s535_s7 = sadd.s32 4294967295, %s756_s6   ;;  %p539_p0 = scmp.ge.s32.totalorder %s756_s6, 1  ;;  %s756_s6 = sphi %s768_s6, %s11_s6  }
   0x2   : > { %p89_p1 = scmp.lt.s32.totalorder %s756_s6, 5 }
   0x4   : > { %p90_p2 = pnand %p539_p0, %p89_p1 }
   0x5   : > { %s540_s8 = sshll.u32 (!%p90_p2), %s535_s7, 3 }
   0x6   : > { %93 = sbr.rel (%p90_p2) target bundleno = 107 (0x6b), region = 24  ;;  %p112_p3 = scmp.lt.s32.totalorder (!%p90_p2), %s540_s8, 31 }
   0xd   : > { %s869_s8 = smov (!%p112_p3, %s540_s8), 31 }
   0xe   : > { %s580_s9 = sshll.u32 %s869_s8, 5 }
   0xf   : > { %s784_s12 = scalar_lea.vmem %s866_s0, %s580_s9  ;;  %s819_s15 = scalar_lea.vmem %s867_s1, %s580_s9 }
  0x10   : > { %v125_v0 = vld [vmem:[%s784_s12] sm:$0xff]  ;;  %v126_v1 = vld [vmem:[%s784_s12 + $0x8] sm:$0xff]  ;;  %v127_v2 = vld [vmem:[%s784_s12 + $0x10] sm:$0xff] }
  0x11   : > { %v546_v3 = vmul.f32 -1.442695, %v125_v0  ;;  %v547_v4 = vmul.f32 -1.442695, %v126_v1  ;;  %v548_v5 = vmul.f32 -1.442695, %v127_v2 }
  0x12   : > { %v128_v6 = vld [vmem:[%s784_s12 + $0x18] sm:$0xff]  ;;  %v129_v7 = vld [vmem:[%s784_s12 + $0x20] sm:$0xff]  ;;  %v130_v8 = vld [vmem:[%s784_s12 + $0x28] sm:$0xff] }
  0x13   : > { %622 = vpow2.f32 %v546_v3  ;;  %v549_v9 = vmul.f32 -1.442695, %v128_v6  ;;  %v550_v10 = vmul.f32 -1.442695, %v129_v7  ;;  %v551_v11 = vmul.f32 -1.442695, %v130_v8 }
  0x14   : > { %624 = vpow2.f32 %v547_v4  ;;  %v131_v12 = vld [vmem:[%s784_s12 + $0x30] sm:$0xff]  ;;  %v132_v13 = vld [vmem:[%s784_s12 + $0x38] sm:$0xff]  ;;  %v133_v14 = vld [vmem:[%s784_s12 + $0x40] sm:$0xff] }
  0x15   : > { %626 = vpow2.f32 %v548_v5  ;;  %v552_v15 = vmul.f32 -1.442695, %v131_v12  ;;  %v553_v16 = vmul.f32 -1.442695, %v132_v13  ;;  %v134_v17 = vld [vmem:[%s784_s12 + $0x48] sm:$0xff]  ;;  %v135_v18 = vld [vmem:[%s784_s12 + $0x50] sm:$0xff] }
  0x16   : > { %628 = vpow2.f32 %v549_v9  ;;  %v554_v19 = vmul.f32 -1.442695, %v133_v14  ;;  %v136_v20 = vld [vmem:[%s784_s12 + $0x58] sm:$0xff]  ;;  %v555_v21 = vmul.f32 -1.442695, %v134_v17  ;;  %v137_v22 = vld [vmem:[%s784_s12 + $0x60] sm:$0xff] }
  0x17   : > { %630 = vpow2.f32 %v550_v10  ;;  %v556_v23 = vmul.f32 -1.442695, %v135_v18  ;;  %v557_v24 = vmul.f32 -1.442695, %v136_v20  ;;  %v558_v25 = vmul.f32 -1.442695, %v137_v22 }
  0x18   : > { %632 = vpow2.f32 %v551_v11  ;;  %v138_v39 = vld [vmem:[%s784_s12 + $0x68] sm:$0xff]  ;;  %v139_v40 = vld [vmem:[%s784_s12 + $0x70] sm:$0xff]  ;;  %v140_v43 = vld [vmem:[%s784_s12 + $0x78] sm:$0xff] }
  0x19   : > { %634 = vpow2.f32 %v552_v15  ;;  %v141_v46 = vld [vmem:[%s784_s12 + $0x80] sm:$0xff]  ;;  %v559_v49 = vmul.f32 -1.442695, %v138_v39  ;;  %v560_v50 = vmul.f32 -1.442695, %v139_v40  ;;  %v142_v51 = vld [vmem:[%s784_s12 + $0x88] sm:$0xff] }
  0x1a   : > { %636 = vpow2.f32 %v553_v16  ;;  %v561_v54 = vmul.f32 -1.442695, %v140_v43  ;;  %v143_v55 = vld [vmem:[%s784_s12 + $0x90] sm:$0xff]  ;;  %v144_v56 = vld [vmem:[%s784_s12 + $0x98] sm:$0xff]  ;;  %v562_v59 = vmul.f32 -1.442695, %v141_v46 }
  0x1b   : > { %638 = vpow2.f32 %v554_v19  ;;  %v145_v60 = vld [vmem:[%s784_s12 + $0xa0] sm:$0xff]  ;;  %v146_v61 = vld [vmem:[%s784_s12 + $0xa8] sm:$0xff]  ;;  %v563_v0 = vmul.f32 -1.442695, %v142_v51  ;;  %v147_v1 = vld [vmem:[%s784_s12 + $0xb0] sm:$0xff] }
  0x1c   : > { %640 = vpow2.f32 %v555_v21  ;;  %v148_v2 = vld [vmem:[%s784_s12 + $0xb8] sm:$0xff]  ;;  %v564_v5 = vmul.f32 -1.442695, %v143_v55  ;;  %v565_v6 = vmul.f32 -1.442695, %v144_v56  ;;  %v149_v7 = vld [vmem:[%s784_s12 + $0xc0] sm:$0xff] }
  0x1d   : > { %v623_v26 = vpop.eup %622  ;;  %642 = vpow2.f32 %v556_v23  ;;  %v566_v10 = vmul.f32 -1.442695, %v145_v60  ;;  %v567_v11 = vmul.f32 -1.442695, %v146_v61  ;;  %v150_v12 = vld [vmem:[%s784_s12 + $0xc8] sm:$0xff] }
  0x1e   : > { %v625_v27 = vpop.eup %624  ;;  %v253_v28 = vadd.f32 1.0, %v623_v26  ;;  %644 = vpow2.f32 %v557_v24  ;;  %v568_v15 = vmul.f32 -1.442695, %v147_v1  ;;  %v569_v16 = vmul.f32 -1.442695, %v148_v2 }
  0x1f   : > { %v627_v29 = vpop.eup %626  ;;  %v254_v30 = vadd.f32 1.0, %v625_v27  ;;  %646 = vpow2.f32 %v558_v25  ;;  %v812_v20 = vmul.f32 -1.442695, %v149_v7  ;;  %v821_v24 = vmul.f32 -1.442695, %v150_v12 }
  0x20   : > { %v629_v31 = vpop.eup %628  ;;  %648 = vrcp.f32 %v253_v28  ;;  %v255_v32 = vadd.f32 1.0, %v627_v29 }
  0x21   : > { %v631_v33 = vpop.eup %630  ;;  %650 = vrcp.f32 %v254_v30  ;;  %v256_v34 = vadd.f32 1.0, %v629_v31 }
  0x22   : > { %v633_v35 = vpop.eup %632  ;;  %652 = vrcp.f32 %v255_v32  ;;  %v257_v36 = vadd.f32 1.0, %v631_v33 }
  0x23   : > { %v635_v37 = vpop.eup %634  ;;  %654 = vrcp.f32 %v256_v34  ;;  %v258_v38 = vadd.f32 1.0, %v633_v35 }
  0x24   : > { %v637_v41 = vpop.eup %636  ;;  %656 = vrcp.f32 %v257_v36  ;;  %v259_v42 = vadd.f32 1.0, %v635_v37 }
  0x25   : > { %v639_v44 = vpop.eup %638  ;;  %658 = vrcp.f32 %v258_v38  ;;  %v260_v45 = vadd.f32 1.0, %v637_v41 }
  0x26   : > { %v641_v47 = vpop.eup %640  ;;  %660 = vrcp.f32 %v259_v42  ;;  %v261_v48 = vadd.f32 1.0, %v639_v44 }
  0x27   : > { %v643_v52 = vpop.eup %642  ;;  %662 = vrcp.f32 %v260_v45  ;;  %v262_v53 = vadd.f32 1.0, %v641_v47 }
  0x28   : > { %v645_v57 = vpop.eup %644  ;;  %664 = vrcp.f32 %v261_v48  ;;  %v263_v58 = vadd.f32 1.0, %v643_v52 }
  0x29   : > { %v647_v62 = vpop.eup %646  ;;  %666 = vrcp.f32 %v262_v53  ;;  %v264_v63 = vadd.f32 1.0, %v645_v57 }
  0x2a   : > { %v649_v3 = vpop.eup %648  ;;  %668 = vrcp.f32 %v263_v58  ;;  %v265_v4 = vadd.f32 1.0, %v647_v62 }
  0x2b   : > { %v651_v8 = vpop.eup %650  ;;  %v582_v9 = vround.rtne.f32 %v649_v3  ;;  %670 = vrcp.f32 %v264_v63 }
  0x2c   : > { %v653_v13 = vpop.eup %652  ;;  %v583_v14 = vround.rtne.f32 %v651_v8  ;;  %672 = vrcp.f32 %v265_v4 }
  0x2d   : > { %v655_v17 = vpop.eup %654  ;;  %v381_v18 = vadd.f32 %v649_v3, %v582_v9  ;;  %v584_v19 = vround.rtne.f32 %v653_v13  ;;  %674 = vpow2.f32 %v559_v49 }
  0x2e   : > { %v657_v21 = vpop.eup %656  ;;  %v382_v22 = vadd.f32 %v651_v8, %v583_v14  ;;  %v585_v23 = vround.rtne.f32 %v655_v17  ;;  %676 = vpow2.f32 %v560_v50 }
  0x2f   : > { %v659_v25 = vpop.eup %658  ;;  %v413_v26 = vsub.f32 %v381_v18, %v649_v3  ;;  %v383_v27 = vadd.f32 %v653_v13, %v584_v19  ;;  %v586_v28 = vround.rtne.f32 %v657_v21  ;;  %678 = vpow2.f32 %v561_v54 }
  0x30   : > { %v661_v29 = vpop.eup %660  ;;  %v414_v30 = vsub.f32 %v382_v22, %v651_v8  ;;  %v384_v31 = vadd.f32 %v655_v17, %v585_v23  ;;  %v587_v32 = vround.rtne.f32 %v659_v25  ;;  %680 = vpow2.f32 %v562_v59 }
  0x31   : > { %v663_v33 = vpop.eup %662  ;;  %445 = vst [vmem:[%s819_s15] sm:$0xff] %v413_v26  ;;  %v415_v34 = vsub.f32 %v383_v27, %v653_v13  ;;  %v385_v35 = vadd.f32 %v657_v21, %v586_v28  ;;  %v588_v36 = vround.rtne.f32 %v661_v29  ;;  %682 = vpow2.f32 %v563_v0  ;;  %v153_v27 = vld [vmem:[%s784_s12 + $0xe0] sm:$0xff] }
  0x32   : > { %v665_v37 = vpop.eup %664  ;;  %446 = vst [vmem:[%s819_s15 + $0x8] sm:$0xff] %v414_v30  ;;  %v416_v38 = vsub.f32 %v384_v31, %v655_v17  ;;  %v386_v39 = vadd.f32 %v659_v25, %v587_v32  ;;  %v589_v40 = vround.rtne.f32 %v663_v33  ;;  %684 = vpow2.f32 %v564_v5  ;;  %v154_v31 = vld [vmem:[%s784_s12 + $0xe8] sm:$0xff] }
  0x33   : > { %v667_v41 = vpop.eup %666  ;;  %447 = vst [vmem:[%s819_s15 + $0x10] sm:$0xff] %v415_v34  ;;  %v417_v42 = vsub.f32 %v385_v35, %v657_v21  ;;  %v387_v43 = vadd.f32 %v661_v29, %v588_v36  ;;  %v590_v44 = vround.rtne.f32 %v665_v37  ;;  %686 = vpow2.f32 %v565_v6  ;;  %v151_v21 = vld [vmem:[%s784_s12 + $0xd0] sm:$0xff] }
  0x34   : > { %v669_v45 = vpop.eup %668  ;;  %448 = vst [vmem:[%s819_s15 + $0x18] sm:$0xff] %v416_v38  ;;  %v418_v46 = vsub.f32 %v386_v39, %v659_v25  ;;  %v388_v47 = vadd.f32 %v663_v33, %v589_v40  ;;  %v591_v48 = vround.rtne.f32 %v667_v41  ;;  %688 = vpow2.f32 %v566_v10  ;;  %v155_v35 = vld [vmem:[%s784_s12 + $0xf0] sm:$0xff]  ;;  %v156_v39 = vld [vmem:[%s784_s12 + $0xf8] sm:$0xff] }
  0x35   : > { %v671_v49 = vpop.eup %670  ;;  %449 = vst [vmem:[%s819_s15 + $0x20] sm:$0xff] %v417_v42  ;;  %v419_v50 = vsub.f32 %v387_v43, %v661_v29  ;;  %v389_v51 = vadd.f32 %v665_v37, %v590_v44  ;;  %v592_v52 = vround.rtne.f32 %v669_v45  ;;  %690 = vpow2.f32 %v567_v11 }
  0x36   : > { %v673_v53 = vpop.eup %672  ;;  %450 = vst [vmem:[%s819_s15 + $0x28] sm:$0xff] %v418_v46  ;;  %v420_v54 = vsub.f32 %v388_v47, %v663_v33  ;;  %v390_v55 = vadd.f32 %v667_v41, %v591_v48  ;;  %v593_v56 = vround.rtne.f32 %v671_v49  ;;  %692 = vpow2.f32 %v568_v15 }
  0x37   : > { %v675_v57 = vpop.eup %674  ;;  %451 = vst [vmem:[%s819_s15 + $0x30] sm:$0xff] %v419_v50  ;;  %v421_v58 = vsub.f32 %v389_v51, %v665_v37  ;;  %v391_v59 = vadd.f32 %v669_v45, %v592_v52  ;;  %v594_v60 = vround.rtne.f32 %v673_v53  ;;  %694 = vpow2.f32 %v569_v16 }
  0x38   : > { %v677_v61 = vpop.eup %676  ;;  %452 = vst [vmem:[%s819_s15 + $0x38] sm:$0xff] %v420_v54  ;;  %v422_v62 = vsub.f32 %v390_v55, %v667_v41  ;;  %v392_v63 = vadd.f32 %v671_v49, %v593_v56  ;;  %v266_v0 = vadd.f32 1.0, %v675_v57  ;;  %696 = vpow2.f32 %v812_v20 }
  0x39   : > { %v679_v1 = vpop.eup %678  ;;  %453 = vst [vmem:[%s819_s15 + $0x40] sm:$0xff] %v421_v58  ;;  %v423_v2 = vsub.f32 %v391_v59, %v669_v45  ;;  %v393_v3 = vadd.f32 %v673_v53, %v594_v60  ;;  %v267_v4 = vadd.f32 1.0, %v677_v61  ;;  %698 = vpow2.f32 %v821_v24  ;;  %v152_v24 = vld [vmem:[%s784_s12 + $0xd8] sm:$0xff] }
  0x3a   : > { %v681_v5 = vpop.eup %680  ;;  %454 = vst [vmem:[%s819_s15 + $0x48] sm:$0xff] %v422_v62  ;;  %v424_v6 = vsub.f32 %v392_v63, %v671_v49  ;;  %700 = vrcp.f32 %v266_v0  ;;  %v268_v7 = vadd.f32 1.0, %v679_v1  ;;  %v572_v30 = vmul.f32 -1.442695, %v151_v21 }
  0x3b   : > { %v683_v8 = vpop.eup %682  ;;  %455 = vst [vmem:[%s819_s15 + $0x50] sm:$0xff] %v423_v2  ;;  %v425_v9 = vsub.f32 %v393_v3, %v673_v53  ;;  %702 = vrcp.f32 %v267_v4  ;;  %v269_v10 = vadd.f32 1.0, %v681_v5  ;;  %v573_v34 = vmul.f32 -1.442695, %v152_v24 }
  0x3c   : > { %v685_v11 = vpop.eup %684  ;;  %456 = vst [vmem:[%s819_s15 + $0x58] sm:$0xff] %v424_v6  ;;  %704 = vrcp.f32 %v268_v7  ;;  %v270_v12 = vadd.f32 1.0, %v683_v8  ;;  %v574_v38 = vmul.f32 -1.442695, %v153_v27  ;;  %v575_v42 = vmul.f32 -1.442695, %v154_v31 }
  0x3d   : > { %v687_v13 = vpop.eup %686  ;;  %457 = vst [vmem:[%s819_s15 + $0x60] sm:$0xff] %v425_v9  ;;  %706 = vrcp.f32 %v269_v10  ;;  %v271_v14 = vadd.f32 1.0, %v685_v11  ;;  %v576_v46 = vmul.f32 -1.442695, %v155_v35  ;;  %v577_v50 = vmul.f32 -1.442695, %v156_v39 }
  0x3e   : > { %v689_v15 = vpop.eup %688  ;;  %708 = vrcp.f32 %v270_v12  ;;  %v272_v16 = vadd.f32 1.0, %v687_v13 }
  0x3f   : > { %v691_v17 = vpop.eup %690  ;;  %710 = vrcp.f32 %v271_v14  ;;  %v273_v18 = vadd.f32 1.0, %v689_v15 }
  0x40   : > { %v693_v19 = vpop.eup %692  ;;  %712 = vrcp.f32 %v272_v16  ;;  %v274_v20 = vadd.f32 1.0, %v691_v17 }
  0x41   : > { %v695_v22 = vpop.eup %694  ;;  %714 = vrcp.f32 %v273_v18  ;;  %v275_v23 = vadd.f32 1.0, %v693_v19 }
  0x42   : > { %v697_v25 = vpop.eup %696  ;;  %716 = vrcp.f32 %v274_v20  ;;  %v276_v26 = vadd.f32 1.0, %v695_v22 }
  0x43   : > { %v699_v28 = vpop.eup %698  ;;  %718 = vrcp.f32 %v275_v23  ;;  %v277_v29 = vadd.f32 1.0, %v697_v25 }
  0x44   : > { %v701_v32 = vpop.eup %700  ;;  %720 = vrcp.f32 %v276_v26  ;;  %v278_v33 = vadd.f32 1.0, %v699_v28 }
  0x45   : > { %v703_v36 = vpop.eup %702  ;;  %v595_v37 = vround.rtne.f32 %v701_v32  ;;  %722 = vrcp.f32 %v277_v29 }
  0x46   : > { %v705_v40 = vpop.eup %704  ;;  %v596_v41 = vround.rtne.f32 %v703_v36  ;;  %724 = vrcp.f32 %v278_v33 }
  0x47   : > { %v707_v43 = vpop.eup %706  ;;  %v394_v44 = vadd.f32 %v701_v32, %v595_v37  ;;  %v597_v45 = vround.rtne.f32 %v705_v40  ;;  %726 = vpow2.f32 %v572_v30 }
  0x48   : > { %v709_v47 = vpop.eup %708  ;;  %v395_v48 = vadd.f32 %v703_v36, %v596_v41  ;;  %v598_v49 = vround.rtne.f32 %v707_v43  ;;  %728 = vpow2.f32 %v573_v34 }
  0x49   : > { %v711_v51 = vpop.eup %710  ;;  %v426_v52 = vsub.f32 %v394_v44, %v701_v32  ;;  %v396_v53 = vadd.f32 %v705_v40, %v597_v45  ;;  %v599_v54 = vround.rtne.f32 %v709_v47  ;;  %730 = vpow2.f32 %v574_v38 }
  0x4a   : > { %v713_v55 = vpop.eup %712  ;;  %v427_v56 = vsub.f32 %v395_v48, %v703_v36  ;;  %v397_v57 = vadd.f32 %v707_v43, %v598_v49  ;;  %v600_v58 = vround.rtne.f32 %v711_v51  ;;  %732 = vpow2.f32 %v575_v42 }
  0x4b   : > { %v715_v59 = vpop.eup %714  ;;  %458 = vst [vmem:[%s819_s15 + $0x68] sm:$0xff] %v426_v52  ;;  %v428_v60 = vsub.f32 %v396_v53, %v705_v40  ;;  %v398_v61 = vadd.f32 %v709_v47, %v599_v54  ;;  %v601_v62 = vround.rtne.f32 %v713_v55  ;;  %734 = vpow2.f32 %v576_v46 }
  0x4c   : > { %v717_v63 = vpop.eup %716  ;;  %459 = vst [vmem:[%s819_s15 + $0x70] sm:$0xff] %v427_v56  ;;  %v429_v0 = vsub.f32 %v397_v57, %v707_v43  ;;  %v399_v1 = vadd.f32 %v711_v51, %v600_v58  ;;  %v602_v2 = vround.rtne.f32 %v715_v59  ;;  %736 = vpow2.f32 %v577_v50 }
  0x4d   : > { %v719_v3 = vpop.eup %718  ;;  %460 = vst [vmem:[%s819_s15 + $0x78] sm:$0xff] %v428_v60  ;;  %v430_v4 = vsub.f32 %v398_v61, %v709_v47  ;;  %v400_v5 = vadd.f32 %v713_v55, %v601_v62  ;;  %v603_v6 = vround.rtne.f32 %v717_v63 }
  0x4e   : > { %v721_v7 = vpop.eup %720  ;;  %461 = vst [vmem:[%s819_s15 + $0x80] sm:$0xff] %v429_v0  ;;  %v431_v8 = vsub.f32 %v399_v1, %v711_v51  ;;  %v401_v9 = vadd.f32 %v715_v59, %v602_v2  ;;  %v604_v10 = vround.rtne.f32 %v719_v3 }
  0x4f   : > { %v723_v11 = vpop.eup %722  ;;  %462 = vst [vmem:[%s819_s15 + $0x88] sm:$0xff] %v430_v4  ;;  %v432_v12 = vsub.f32 %v400_v5, %v713_v55  ;;  %v402_v13 = vadd.f32 %v717_v63, %v603_v6  ;;  %v605_v14 = vround.rtne.f32 %v721_v7 }
  0x50   : > { %v725_v15 = vpop.eup %724  ;;  %463 = vst [vmem:[%s819_s15 + $0x90] sm:$0xff] %v431_v8  ;;  %v433_v16 = vsub.f32 %v401_v9, %v715_v59  ;;  %v403_v17 = vadd.f32 %v719_v3, %v604_v10  ;;  %v606_v18 = vround.rtne.f32 %v723_v11 }
  0x51   : > { %v727_v19 = vpop.eup %726  ;;  %464 = vst [vmem:[%s819_s15 + $0x98] sm:$0xff] %v432_v12  ;;  %v434_v20 = vsub.f32 %v402_v13, %v717_v63  ;;  %v404_v21 = vadd.f32 %v721_v7, %v605_v14  ;;  %v607_v22 = vround.rtne.f32 %v725_v15 }
  0x52   : > { %v729_v23 = vpop.eup %728  ;;  %465 = vst [vmem:[%s819_s15 + $0xa0] sm:$0xff] %v433_v16  ;;  %v435_v24 = vsub.f32 %v403_v17, %v719_v3  ;;  %v405_v25 = vadd.f32 %v723_v11, %v606_v18  ;;  %v279_v26 = vadd.f32 1.0, %v727_v19 }
  0x53   : > { %v731_v27 = vpop.eup %730  ;;  %466 = vst [vmem:[%s819_s15 + $0xa8] sm:$0xff] %v434_v20  ;;  %v436_v28 = vsub.f32 %v404_v21, %v721_v7  ;;  %v406_v29 = vadd.f32 %v725_v15, %v607_v22  ;;  %v280_v30 = vadd.f32 1.0, %v729_v23 }
  0x54   : > { %v733_v31 = vpop.eup %732  ;;  %467 = vst [vmem:[%s819_s15 + $0xb0] sm:$0xff] %v435_v24  ;;  %v437_v32 = vsub.f32 %v405_v25, %v723_v11  ;;  %738 = vrcp.f32 %v279_v26  ;;  %v281_v33 = vadd.f32 1.0, %v731_v27 }
  0x55   : > { %v735_v34 = vpop.eup %734  ;;  %468 = vst [vmem:[%s819_s15 + $0xb8] sm:$0xff] %v436_v28  ;;  %v438_v35 = vsub.f32 %v406_v29, %v725_v15  ;;  %740 = vrcp.f32 %v280_v30  ;;  %v282_v36 = vadd.f32 1.0, %v733_v31 }
  0x56   : > { %v737_v37 = vpop.eup %736  ;;  %469 = vst [vmem:[%s819_s15 + $0xc0] sm:$0xff] %v437_v32  ;;  %742 = vrcp.f32 %v281_v33  ;;  %v283_v38 = vadd.f32 1.0, %v735_v34 }
  0x57   : > { %470 = vst [vmem:[%s819_s15 + $0xc8] sm:$0xff] %v438_v35  ;;  %744 = vrcp.f32 %v282_v36  ;;  %v284_v39 = vadd.f32 1.0, %v737_v37 }
  0x58   : > { %746 = vrcp.f32 %v283_v38 }
  0x59   : > { %748 = vrcp.f32 %v284_v39 }
  0x5e   : > { %v739_v40 = vpop.eup %738 }
  0x5f   : > { %v741_v41 = vpop.eup %740  ;;  %v608_v42 = vround.rtne.f32 %v739_v40 }
  0x60   : > { %v743_v43 = vpop.eup %742  ;;  %v609_v44 = vround.rtne.f32 %v741_v41 }
  0x61   : > { %v745_v45 = vpop.eup %744  ;;  %v407_v46 = vadd.f32 %v739_v40, %v608_v42  ;;  %v610_v47 = vround.rtne.f32 %v743_v43 }
  0x62   : > { %v747_v48 = vpop.eup %746  ;;  %v408_v49 = vadd.f32 %v741_v41, %v609_v44  ;;  %v611_v50 = vround.rtne.f32 %v745_v45 }
  0x63   : > { %v749_v51 = vpop.eup %748  ;;  %v439_v52 = vsub.f32 %v407_v46, %v739_v40  ;;  %v409_v53 = vadd.f32 %v743_v43, %v610_v47  ;;  %v612_v54 = vround.rtne.f32 %v747_v48 }
  0x64   : > { %v440_v55 = vsub.f32 %v408_v49, %v741_v41  ;;  %v410_v56 = vadd.f32 %v745_v45, %v611_v50  ;;  %v613_v57 = vround.rtne.f32 %v749_v51 }
  0x65   : > { %471 = vst [vmem:[%s819_s15 + $0xd0] sm:$0xff] %v439_v52  ;;  %v441_v58 = vsub.f32 %v409_v53, %v743_v43  ;;  %v411_v59 = vadd.f32 %v747_v48, %v612_v54 }
  0x66   : > { %472 = vst [vmem:[%s819_s15 + $0xd8] sm:$0xff] %v440_v55  ;;  %v442_v60 = vsub.f32 %v410_v56, %v745_v45  ;;  %v412_v61 = vadd.f32 %v749_v51, %v613_v57 }
  0x67   : > { %473 = vst [vmem:[%s819_s15 + $0xe0] sm:$0xff] %v441_v58  ;;  %v443_v62 = vsub.f32 %v411_v59, %v747_v48 }
  0x68   : > { %474 = vst [vmem:[%s819_s15 + $0xe8] sm:$0xff] %v442_v60  ;;  %v444_v63 = vsub.f32 %v412_v61, %v749_v51 }
  0x69   : > { %475 = vst [vmem:[%s819_s15 + $0xf0] sm:$0xff] %v443_v62 }
  0x6a   : > { %476 = vst [vmem:[%s819_s15 + $0xf8] sm:$0xff] %v444_v63 }
  0x6b PF: > { %s11_s6 = sadd.s32 1, %s756_s6  }
  0x6c   : > { %p8_p4 = scmp.ge.s32.totalorder %s11_s6, 6  }
  0x6e   :  { %10 = sbr.rel (!%p8_p4) target bundleno = 1 (0x1), region = 54 }

</bundles_post_ra>
